<compile_context>
chip_gen: v7x
topology: tpu7x:2x2x1
jax: 0.10.0
libtpu: 0.0.40
codegen_flags: <defaults>
</compile_context>

<pallas_src>
import functools

import jax
import jax.numpy as jnp
from jax.experimental import pallas as pl
from jax.experimental.pallas import tpu as pltpu


# --------------------------- chip / tiling helpers ---------------------------

_PARALLEL = pltpu.CompilerParams(dimension_semantics=("parallel",))


def _round_up(x, m):
    return ((x + m - 1) // m) * m


def _chip_config():
    """Per-generation VMEM tile budget (bytes, incl. double-buffering) and
    whether the chip has 2 TensorCores (v7x -> keep grid length >= 2)."""
    try:
        kind = jax.devices()[0].device_kind.lower()
    except Exception:
        kind = ""
    if "v7" in kind:
        return 16 * 1024 * 1024, True      # 64 MiB VMEM / 32 MiB scoped, 2 TC
    if "v6" in kind:
        return 24 * 1024 * 1024, False     # 128 MiB VMEM / 32 MiB scoped
    if "v5" in kind:
        return 12 * 1024 * 1024, False     # 16 MiB scoped default
    return 8 * 1024 * 1024, False          # unknown / interpret: conservative


def _batch_tile(b, cols_per_row, itemsize, budget, two_tc):
    """Pick the batch tile: large enough to amortize the ~0.35us/step grid
    overhead, small enough that the double-buffered streams fit the budget.
    `cols_per_row` counts ALL streamed elements (inputs + outputs) per row."""
    align = 16 if itemsize < 4 else 8
    per_row = max(cols_per_row * itemsize * 2, 1)  # x2: double buffering
    tb = max(align, min(1024, (budget // per_row // align) * align))
    if b <= tb:
        # Whole batch fits in one tile; on v7x split it so both cores work.
        if two_tc and b >= 2 * align:
            return _round_up(pl.cdiv(b, 2), align)
        return b
    return tb


# ------------------------------ kernels --------------------------------------

def _kl_kernel(d, z_ref, o_ref):
    """KL( N(mu, diag(exp(lv))) || N(0,I) ), summed over D.  -> (TB, 1)."""
    x = z_ref[...].astype(jnp.float32)
    mu, lv = x[:, :d], x[:, d:]
    o_ref[...] = jnp.sum(0.5 * (mu * mu + jnp.exp(lv) - 1.0 - lv),
                         axis=-1, keepdims=True)


def _sample_kernel(d, z_ref, eps_ref, o_ref):
    """Reparameterized sample with externally supplied noise."""
    x = z_ref[...].astype(jnp.float32)
    mu, lv = x[:, :d], x[:, d:]
    eps = eps_ref[...].astype(jnp.float32)
    o_ref[...] = (mu + jnp.exp(0.5 * lv) * eps).astype(o_ref.dtype)


def _kl_sample_kernel(d, z_ref, eps_ref, kl_ref, s_ref):
    """Fused training-step kernel: KL + reparameterized sample, z read once.
    exp(lv) is computed once and reused (KL term and sigma = sqrt(exp(lv)))."""
    x = z_ref[...].astype(jnp.float32)
    mu, lv = x[:, :d], x[:, d:]
    e = jnp.exp(lv)
    kl_ref[...] = jnp.sum(0.5 * (mu * mu + e - 1.0 - lv),
                          axis=-1, keepdims=True)
    sigma = jnp.sqrt(e)
    eps = eps_ref[...].astype(jnp.float32)
    s_ref[...] = (mu + sigma * eps).astype(s_ref.dtype)


def _mean_kernel(d, z_ref, o_ref):
    """Inference-mode 'sample': return the mean.  z_ref is either the mu half
    (width d, lane-aligned case) or the full [mu|logvar] row (width 2d)."""
    o_ref[...] = z_ref[:, :d]


# ------------------------------ wrapper ---------------------------------------

class PallasPrior:
    """Isotropic-Gaussian concretization of cyto_dl's abstract `Prior`."""

    def __init__(self, dimensionality: int, **kwargs):
        self.dimensionality = dimensionality
        self._budget, self._two_tc = _chip_config()

    def __len__(self):
        return self.dimensionality

    @property
    def param_size(self):
        return 2 * self.dimensionality

    # -- helpers -----------------------------------------------------------
    def _check(self, z):
        b, two_d = z.shape
        assert two_d == 2 * self.dimensionality
        return b, two_d // 2

    def _tile(self, b, cols, itemsize):
        return _batch_tile(b, cols, itemsize, self._budget, self._two_tc)

    # -- KL ------------------------------------------------------------------
    def kl_divergence(self, z):
        b, d = self._check(z)
        tb = self._tile(b, 2 * d + 1, jnp.dtype(z.dtype).itemsize)
        return pl.pallas_call(
            functools.partial(_kl_kernel, d),
            out_shape=jax.ShapeDtypeStruct((b, 1), jnp.float32),
            grid=(pl.cdiv(b, tb),),
            in_specs=[pl.BlockSpec((tb, 2 * d), lambda i: (i, 0))],
            out_specs=pl.BlockSpec((tb, 1), lambda i: (i, 0)),
            compiler_params=_PARALLEL,
        )(z)

    # -- sample ----------------------------------------------------------------
    def sample(self, z, inference=False, eps=None, key=None):
        b, d = self._check(z)
        itemsize = jnp.dtype(z.dtype).itemsize

        if inference:
            aligned = (d % 128 == 0)
            in_w = d if aligned else 2 * d   # mu-only DMA when lane-aligned
            tb = self._tile(b, in_w + d, itemsize)
            return pl.pallas_call(
                functools.partial(_mean_kernel, d),
                out_shape=jax.ShapeDtypeStruct((b, d), z.dtype),
                grid=(pl.cdiv(b, tb),),
                in_specs=[pl.BlockSpec((tb, in_w), lambda i: (i, 0))],
                out_specs=pl.BlockSpec((tb, d), lambda i: (i, 0)),
                compiler_params=_PARALLEL,
            )(z)

        if eps is None:
            if key is None:
                key = jax.random.PRNGKey(0)  # pass a fresh key per step in training
            eps = jax.random.normal(key, (b, d), dtype=jnp.float32)

        tb = self._tile(b, 4 * d, max(itemsize, 4))
        return pl.pallas_call(
            functools.partial(_sample_kernel, d),
            out_shape=jax.ShapeDtypeStruct((b, d), z.dtype),
            grid=(pl.cdiv(b, tb),),
            in_specs=[pl.BlockSpec((tb, 2 * d), lambda i: (i, 0)),
                      pl.BlockSpec((tb, d), lambda i: (i, 0))],
            out_specs=pl.BlockSpec((tb, d), lambda i: (i, 0)),
            compiler_params=_PARALLEL,
        )(z, eps)

    # -- fused KL + sample (training step; z read from HBM once) --------------
    def kl_and_sample(self, z, eps=None, key=None):
        b, d = self._check(z)
        if eps is None:
            if key is None:
                key = jax.random.PRNGKey(0)
            eps = jax.random.normal(key, (b, d), dtype=jnp.float32)
        tb = self._tile(b, 4 * d + 1, max(jnp.dtype(z.dtype).itemsize, 4))
        return pl.pallas_call(
            functools.partial(_kl_sample_kernel, d),
            out_shape=(jax.ShapeDtypeStruct((b, 1), jnp.float32),
                       jax.ShapeDtypeStruct((b, d), z.dtype)),
            grid=(pl.cdiv(b, tb),),
            in_specs=[pl.BlockSpec((tb, 2 * d), lambda i: (i, 0)),
                      pl.BlockSpec((tb, d), lambda i: (i, 0))],
            out_specs=(pl.BlockSpec((tb, 1), lambda i: (i, 0)),
                       pl.BlockSpec((tb, d), lambda i: (i, 0))),
            compiler_params=_PARALLEL,
        )(z, eps)

    # -- torch-like dispatch ---------------------------------------------------
    def forward(self, z, mode="kl", inference=False, **kwargs):
        if mode == "kl":
            return self.kl_divergence(z)
        if mode == "sample":
            return self.sample(z, inference=inference, **kwargs)
        raise ValueError(f"unknown mode: {mode}")

    __call__ = forward


# --------------------------- pure-JAX reference -------------------------------

def _kl_ref(z):
    d = z.shape[-1] // 2
    mu, lv = z[:, :d], z[:, d:]
    return jnp.sum(0.5 * (mu * mu + jnp.exp(lv) - 1.0 - lv), axis=-1, keepdims=True)


def _sample_ref(z, eps):
    d = z.shape[-1] // 2
    mu, lv = z[:, :d], z[:, d:]
    return mu + jnp.exp(0.5 * lv) * eps


# ------------------------------- demo -----------------------------------------

if __name__ == "__main__":
    key = jax.random.PRNGKey(0)
    kz, keps, kz2 = jax.random.split(key, 3)

    # lane-dense path (D % 128 == 0), small shapes
    d1, b1 = 128, 16
    z = jax.random.normal(kz, (b1, 2 * d1), dtype=jnp.float32)
    eps = jax.random.normal(keps, (b1, d1), dtype=jnp.float32)
    prior = PallasPrior(d1)

    kl = prior(z, mode="kl")
    samp = prior(z, mode="sample", eps=eps)
    mean = prior(z, mode="sample", inference=True)
    kl_f, samp_f = prior.kl_and_sample(z, eps=eps)
    jax.block_until_ready((kl, samp, mean, kl_f, samp_f))

    assert kl.shape == (b1, 1)
    assert jnp.allclose(kl, _kl_ref(z), atol=1e-5, rtol=1e-5)
    assert jnp.allclose(samp, _sample_ref(z, eps), atol=1e-5, rtol=1e-5)
    assert jnp.allclose(mean, z[:, :d1], atol=1e-6)
    assert jnp.allclose(kl_f, _kl_ref(z), atol=1e-5, rtol=1e-5)
    assert jnp.allclose(samp_f, _sample_ref(z, eps), atol=1e-4, rtol=1e-5)

    # fallback path (D not a multiple of 128): packed z, split in-kernel
    d2, b2 = 32, 8
    z2 = jax.random.normal(kz2, (b2, 2 * d2), dtype=jnp.float32)
    eps2 = jnp.ones((b2, d2), jnp.float32)
    prior2 = PallasPrior(d2)

    kl2 = prior2(z2, mode="kl")
    mean2 = prior2(z2, mode="sample", inference=True)
    samp2 = prior2(z2, mode="sample", eps=eps2)
    kl2_f, samp2_f = prior2.kl_and_sample(z2, eps=eps2)
    jax.block_until_ready((kl2, mean2, samp2, kl2_f, samp2_f))

    assert jnp.allclose(kl2, _kl_ref(z2), atol=1e-5, rtol=1e-5)
    assert jnp.allclose(mean2, z2[:, :d2], atol=1e-6)
    assert jnp.allclose(samp2, _sample_ref(z2, eps2), atol=1e-5, rtol=1e-5)
    assert jnp.allclose(kl2_f, _kl_ref(z2), atol=1e-5, rtol=1e-5)
    assert jnp.allclose(samp2_f, _sample_ref(z2, eps2), atol=1e-4, rtol=1e-5)

    print("KERNEL_OK")
</pallas_src>

<mosaic_0001>
module attributes {stable_mosaic.version = 11 : i64} {
  func.func @_kl_kernel(%arg0: i32, %arg1: memref<16x256xf32, #tpu.memory_space<vmem>>, %arg2: memref<16x1xf32, #tpu.memory_space<vmem>>) attributes {dimension_semantics = [#tpu.dimension_semantics<parallel>], iteration_bounds = array<i64: 1>, scalar_prefetch = 0 : i64, scratch_operands = 0 : i64, tpu.core_type = #tpu.core_type<tc>, window_params = [{transform_indices = @transform_0, window_bounds = array<i64: 16, 256>}, {transform_indices = @transform_1, window_bounds = array<i64: 16, 1>}]} {
    %c0 = arith.constant 0 : index
    %c0_0 = arith.constant 0 : index
    %0 = vector.load %arg1[%c0, %c0_0] : memref<16x256xf32, #tpu.memory_space<vmem>>, vector<16x256xf32>
    %1 = vector.extract_strided_slice %0 {offsets = [0, 0], sizes = [16, 128], strides = [1, 1]} : vector<16x256xf32> to vector<16x128xf32>
    %2 = vector.extract_strided_slice %0 {offsets = [0, 128], sizes = [16, 128], strides = [1, 1]} : vector<16x256xf32> to vector<16x128xf32>
    %3 = arith.mulf %1, %1 : vector<16x128xf32>
    %4 = math.exp %2 : vector<16x128xf32>
    %5 = arith.addf %3, %4 : vector<16x128xf32>
    %cst = arith.constant 1.000000e+00 : f32
    %6 = vector.broadcast %cst : f32 to vector<16x128xf32>
    %7 = arith.subf %5, %6 : vector<16x128xf32>
    %8 = arith.subf %7, %2 : vector<16x128xf32>
    %cst_1 = arith.constant 5.000000e-01 : f32
    %9 = vector.broadcast %cst_1 : f32 to vector<16x128xf32>
    %10 = arith.mulf %9, %8 : vector<16x128xf32>
    %cst_2 = arith.constant dense<0.000000e+00> : vector<16xf32>
    %11 = vector.multi_reduction <add>, %10, %cst_2 [1] : vector<16x128xf32> to vector<16xf32>
    %12 = vector.shape_cast %11 : vector<16xf32> to vector<16x1xf32>
    %c0_3 = arith.constant 0 : index
    %c0_4 = arith.constant 0 : index
    %13 = vector.load %arg2[%c0_3, %c0_4] : memref<16x1xf32, #tpu.memory_space<vmem>>, vector<16x1xf32>
    tpu.vector_store %arg2[%c0_3, %c0_4], %12 {strides = array<i32>} : memref<16x1xf32, #tpu.memory_space<vmem>>, vector<16x1xf32>,
    return
  }
  func.func @transform_0(%arg0: i32) -> (i32, i32) {
    %c0_i32 = arith.constant 0 : i32
    %c0_i32_0 = arith.constant 0 : i32
    return %arg0, %c0_i32 : i32, i32
  }
  func.func @transform_1(%arg0: i32) -> (i32, i32) {
    %c0_i32 = arith.constant 0 : i32
    %c0_i32_0 = arith.constant 0 : i32
    return %arg0, %c0_i32 : i32, i32
  }
}

</mosaic_0001>

<bundles_post_ra>
// kernel: tpu_custom_call.1
= control target key start
LH: loop header
LB: loop body
LE: loop exit
PB: predicated region body
PF: predicated region fallthrough
CT: control target
= control target key end

     0   :  { %6 = vsyncpa [#allocation3], 0  ;;  %s85_s6 = smov [#allocation2]   ;;  %s116_s0 = inlined_call_operand.hbm [shape: f32[16,256], index: 0, kind: input, shape index: {}]   ;;  %s117_s1 = inlined_call_operand.vmem [shape: f32[16,1], index: 1, kind: output, shape index: {}]  }
   0x1   :  { %s12_s7 = sshll.u32 %s85_s6, 4  ;;  %s61_s10 = scalar_lea.hbm %s116_s0, 512  ;;  %s13_s7 = int_to_ptr.vmem [resolvable:$true] %s12_s7 }
   0x2   :  { %p62_p0 = scmp.ne.s32.totalorder %s116_s0, %s61_s10  ;;  %p65_p1 = scmp.lt.u32.totalorder %s61_s10, %s116_s0 }
   0x4   :  { %p67_p2 = pnand %p65_p1, %p62_p0 }
   0x6   :  { %70 = shalt.err (!%p67_p2)
}
   0x7   :  { %s71_s15 = scalar_lea.vmem %s13_s7, 512  ;;  %p76_p4 = scmp.lt.s32.totalorder %s13_s7, %s13_s7 }
   0x8   :  { %p72_p3 = scmp.ne.s32.totalorder %s13_s7, %s71_s15  ;;  %p77_p5 = scmp.lt.s32.totalorder %s71_s15, %s71_s15 }
   0xa   :  { %p78_p6 = por %p77_p5, %p76_p4 }
   0xc   :  { %p79_p7 = pnand %p78_p6, %p72_p3 }
   0xe   :  { %82 = shalt.err (!%p79_p7)
}
   0xf   :  { %s86_s16 = smov 256   ;;  %s87_s17 = smov 16  }
  0x10   :  { %18 = dma.hbm_to_vmem [thread:$0]  %s116_s0, 512, %s13_s7, [#allocation3], %s86_s16, %s86_s16, %s87_s17  }
  0x11   :  { %83 = dma.done.wait [#allocation3], 512  }
  0x12   :  { %84 = vsyncadd [#allocation3], 4294966784  ;;  %v23_v0 = vld [vmem:[#allocation2 + $0x8] sm:$0xff]  ;;  %v25_v2 = vld [vmem:[#allocation2 + $0x18] sm:$0xff]  ;;  %vm44_vm0 = vcmask 7168  }
  0x13   :  { %v28_v1 = vmul.f32 1.442695, %v23_v0  ;;  %v30_v3 = vmul.f32 1.442695, %v25_v2  ;;  %v22_v4 = vld [vmem:[#allocation2] sm:$0xff]  ;;  %v24_v5 = vld [vmem:[#allocation2 + $0x10] sm:$0xff] }
  0x14   :  { %v26_v6 = vmul.f32 %v22_v4, %v22_v4  ;;  %v27_v7 = vmul.f32 %v24_v5, %v24_v5 }
  0x15   :  { %57 = vpow2.f32 %v28_v1 }
  0x16   :  { %59 = vpow2.f32 %v30_v3 }
  0x1f   :  { %v58_v8 = vpop.eup %57 }
  0x20   :  { %v60_v9 = vpop.eup %59  ;;  %v32_v10 = vadd.f32 %v58_v8, %v26_v6 }
  0x21   :  { %v33_v11 = vadd.f32 %v60_v9, %v27_v7 }
  0x22   :  { %v52_v12 = vadd.f32 -1.0, %v32_v10 }
  0x23   :  { %v53_v13 = vadd.f32 -1.0, %v33_v11 }
  0x24   :  { %v36_v14 = vsub.f32 %v52_v12, %v23_v0 }
  0x25   :  { %v37_v15 = vsub.f32 %v53_v13, %v25_v2 }
  0x26   :  { %v38_v16 = vmul.f32 0.5, %v36_v14 }
  0x27   :  { %v39_v17 = vmul.f32 0.5, %v37_v15 }
  0x28   :  { %40 = vadd.xlane.f32.xlu0 %v38_v16 }
  0x2c   :  { %42 = vadd.xlane.f32.xlu0 %v39_v17 }
  0xb5   :  { %v41_v18 = vpop.xlane.xlu0 %40 }
  0xb6   :  { %45 = vst.msk [vmem:[%s117_s1] sm:$0xff] %vm44_vm0, %v41_v18 }
  0xb9   :  { %v43_v19 = vpop.xlane.xlu0 %42 }
  0xba   :  { %46 = vst.msk [vmem:[%s117_s1 + $0x8] sm:$0xff] %vm44_vm0, %v43_v19 }
  0xbb   :  { %51 = vsyncpa [#allocation3], 1 }

</bundles_post_ra>
